<compile_context>
chip_gen: v7x
topology: tpu7x:2x2x1
jax: 0.10.0
libtpu: 0.0.40
codegen_flags: <defaults>
</compile_context>

<pallas_src>
import functools

import jax
import jax.numpy as jnp
from jax import lax
from jax.experimental import pallas as pl
from jax.experimental.pallas import tpu as pltpu

LANES = 128     # vreg lane width — feature dims are zero-padded to multiples of this
SUBLANES = 8    # batch tiles are multiples of this


def _round_up(n, m):
    return (n + m - 1) // m * m


def _pick_tile_m(n):
    """Batch tile size.

    v5e / v6e have a single TensorCore: one grid step (per-step overhead
    ~0.35us + pipeline prologue dominates at small N, and there is no second
    core to feed).  v7x has 2 TensorCores per chip: keep >= 2 grid steps so the
    "parallel" batch axis shards across both cores.
    """
    kind = ""
    try:
        kind = jax.devices()[0].device_kind.lower()
    except Exception:
        pass
    if "v7" in kind:                      # 2 TCs/chip -> want >= 2 grid steps
        tile = max(SUBLANES, _round_up(max(n // 2, 1), SUBLANES))
    else:                                 # single TC -> 1 grid step if it fits
        tile = _round_up(max(n, 1), SUBLANES)
    return min(tile, 512)


# ------------------------- fused MLP (+ per-tile partial sums) kernel -----------------
def _make_mlp_kernel(n_layers, compute_dtype, tile_m, n_valid_rows, n_pad):
    mask_pad_rows = (n_pad != n_valid_rows)  # ReLU(bias) != 0 on zero-padded rows

    def kernel(*refs):
        x_ref = refs[0]
        wb_refs = refs[1:1 + 2 * n_layers]
        out_ref = refs[1 + 2 * n_layers]
        psum_ref = refs[2 + 2 * n_layers]

        h = x_ref[...]
        for li in range(n_layers):
            w = wb_refs[2 * li][...]           # (in_pad, out_pad), compute_dtype
            b = wb_refs[2 * li + 1][...]       # (1, out_pad), f32
            acc = jnp.dot(h.astype(compute_dtype), w,
                          preferred_element_type=jnp.float32)   # MXU, f32 accumulate
            h = jnp.maximum(acc + b, 0.0)      # bias add + ReLU in f32 (v5e-safe)

        out_ref[...] = h.astype(out_ref.dtype)  # lane-dense store (out_f_pad lanes)

        # Fused reduction: per-tile column sums of the final activations, emitted
        # as ONE lane-dense (1, out_f_pad) row per tile (no (tile_m,1) masked
        # stores, no (n_pad,1) HBM writeback). Padded *columns* are exactly zero;
        # padded *rows* must be masked out (ReLU(bias) != 0).
        hs = h
        if mask_pad_rows:
            base = pl.program_id(0) * tile_m
            rows = lax.broadcasted_iota(jnp.int32, (tile_m, 1), 0) + base
            hs = jnp.where(rows < n_valid_rows, h, 0.0)
        psum_ref[...] = jnp.sum(hs, axis=0, keepdims=True)

    return kernel


def mlp_forward_with_partial_sums(x, weights, biases, *, tile_m=None,
                                  compute_dtype=jnp.float32):
    """Runs the whole Linear+ReLU stack in a single pallas_call.

    Returns (out_padded, col_partial_sums):
      out_padded        : (n_pad, out_f_pad) in `compute_dtype`; out_padded[:N, :out_f]
                          equals the PyTorch MLP output (bf16-rounded on the bf16 path).
      col_partial_sums  : (num_tiles, out_f_pad) f32; sum() over it equals
                          out.sum() of the real (N, out_f) output exactly.

    For much larger layer widths: raise vmem_limit_bytes via
    pltpu.CompilerParams(vmem_limit_bytes=...) (v5e scoped default is 16 MiB;
    v7x has only 64 MiB physical VMEM and keeps one resident weight copy per TC).
    """
    N, in_f = x.shape
    n_layers = len(weights)

    if tile_m is None:
        tile_m = _pick_tile_m(N)

    in_f_pad = _round_up(in_f, LANES)
    n_pad = _round_up(N, tile_m)

    x_p = x.astype(compute_dtype)
    if (in_f_pad, n_pad) != (in_f, N):
        x_p = jnp.pad(x_p, ((0, n_pad - N), (0, in_f_pad - in_f)))

    # Zero-pad every feature dim to 128 lanes; pad weights/biases are zero and
    # ReLU(0) = 0, so real columns are bit-exact while every matmul is full
    # width on the MXU and every store is lane-dense.
    w_ps, b_ps = [], []
    prev_pad = in_f_pad
    for w, b in zip(weights, biases):
        fi, fo = w.shape
        fo_pad = _round_up(fo, LANES)
        w_ps.append(jnp.pad(w, ((0, prev_pad - fi), (0, fo_pad - fo))).astype(compute_dtype))
        b_ps.append(jnp.pad(b.reshape(1, -1), ((0, 0), (0, fo_pad - fo))).astype(jnp.float32))
        prev_pad = fo_pad
    out_f_pad = prev_pad

    num_tiles = n_pad // tile_m
    grid = (num_tiles,)

    in_specs = [pl.BlockSpec((tile_m, in_f_pad), lambda i: (i, 0))]
    args = [x_p]
    for w_p, b_p in zip(w_ps, b_ps):
        # Resident (grid-invariant) weights / biases; index_map is constant so
        # they are DMA'd once. (pipeline_mode=pl.Buffered(1) would also drop the
        # second buffer — only worth it at real layer widths on v7x.)
        in_specs.append(pl.BlockSpec(w_p.shape, lambda i: (0, 0)))
        in_specs.append(pl.BlockSpec(b_p.shape, lambda i: (0, 0)))
        args.append(w_p)
        args.append(b_p)

    out_padded, col_psums = pl.pallas_call(
        _make_mlp_kernel(n_layers, compute_dtype, tile_m, N, n_pad),
        grid=grid,
        in_specs=in_specs,
        out_specs=[
            pl.BlockSpec((tile_m, out_f_pad), lambda i: (i, 0)),  # lane-dense store
            pl.BlockSpec((1, out_f_pad), lambda i: (i, 0)),       # lane-dense partials
        ],
        out_shape=[
            jax.ShapeDtypeStruct((n_pad, out_f_pad), compute_dtype),
            jax.ShapeDtypeStruct((num_tiles, out_f_pad), jnp.float32),
        ],
        compiler_params=pltpu.CompilerParams(
            dimension_semantics=("parallel",),  # shards batch tiles across v7x's 2 TCs
        ),
    )(*args)

    return out_padded, col_psums


# ----------------------------------- forward ----------------------------------------
def my_module_forward(x, mask, weights, biases, *, compute_dtype=jnp.float32,
                      tile_m=None, argwhere_size=None):
    """Matches MyModule.forward.  compute_dtype=jnp.bfloat16 is beneficial on all
    TPU generations (incl. v5e): bf16-native MXU + half the DMA bytes, f32
    accumulation inside the kernel. Keep f32 for exact-parity tests."""
    N = x.shape[0]
    out_f = weights[-1].shape[1]

    out_padded, col_psums = mlp_forward_with_partial_sums(
        x, weights, biases, tile_m=tile_m, compute_dtype=compute_dtype)

    # Slice/cast the padded slab only where consumed (single fused XLA op).
    out = out_padded[:N, :out_f].astype(jnp.float32)

    # threshold = out.sum(axis=1).mean(); the partial sums were produced inside
    # the fused kernel, so this is only a tiny reduction in XLA.
    threshold = jnp.sum(col_psums) / N

    if argwhere_size is None:
        # TODO(synk): np.argwhere has a data-dependent output shape; without a
        # static `size` bound it must run eagerly (no fixed-shape Pallas equivalent).
        hi_idx = jnp.argwhere(mask > threshold)
    else:
        hi_idx = jnp.argwhere(mask > threshold, size=argwhere_size, fill_value=-1)
    return out, hi_idx


# ------------------------------- parameter init -------------------------------------
def init_linear_params(key, sizes):
    """PyTorch-style nn.Linear init: U(-1/sqrt(fan_in), 1/sqrt(fan_in)).

    Weights are stored pre-transposed as (in_features, out_features) so the kernel
    computes x @ W + b (== PyTorch's x @ W_torch.T + b).
    """
    weights, biases = [], []
    for s in range(len(sizes) - 1):
        fan_in, fan_out = sizes[s], sizes[s + 1]
        key, kw, kb = jax.random.split(key, 3)
        bound = 1.0 / jnp.sqrt(jnp.float32(fan_in))
        w = jax.random.uniform(kw, (fan_in, fan_out), jnp.float32, -bound, bound)
        b = jax.random.uniform(kb, (fan_out,), jnp.float32, -bound, bound)
        weights.append(w)
        biases.append(b)
    return weights, biases


if __name__ == "__main__":
    key = jax.random.PRNGKey(0)

    # Small shapes consistent with the module's forward:
    #   input: (N, in_features), mask: 3-D tensor compared against a scalar threshold.
    N = 256
    in_features = 128
    hidden_sizes = [64, 64]
    out_features = 32
    mask_shape = (4, 16, 16)

    key, kx, km, kp = jax.random.split(key, 4)
    x = jax.random.uniform(kx, (N, in_features), jnp.float32)   # like torch.rand
    mask = jax.random.uniform(km, mask_shape, jnp.float32)      # like torch.rand

    sizes = [in_features] + hidden_sizes + [out_features]
    weights, biases = init_linear_params(kp, sizes)

    # ---- plain-JAX reference (forced full-f32 matmuls) ----
    h_ref = x
    for w, b in zip(weights, biases):
        h_ref = jnp.maximum(
            jnp.dot(h_ref, w, precision=lax.Precision.HIGHEST) + b, 0.0)
    thr_ref = h_ref.sum(axis=1).mean()
    hi_idx_ref = jnp.argwhere(mask > thr_ref)

    # ---- f32 kernel path (parity with the PyTorch module) ----
    out, hi_idx = my_module_forward(x, mask, weights, biases,
                                    compute_dtype=jnp.float32)
    jax.block_until_ready(out)
    jax.block_until_ready(hi_idx)

    _, psums = mlp_forward_with_partial_sums(x, weights, biases,
                                             compute_dtype=jnp.float32)
    thr = jnp.sum(psums) / N
    assert out.shape == (N, out_features)
    # Tolerances account for MXU matmul precision modes (f32 multi-pass vs bf16 pass).
    assert jnp.allclose(out, h_ref, atol=1e-2, rtol=1e-2)
    assert jnp.allclose(thr, thr_ref, atol=2e-2, rtol=1e-2)
    assert hi_idx.shape[1] == hi_idx_ref.shape[1] == mask.ndim
    assert abs(int(hi_idx.shape[0]) - int(hi_idx_ref.shape[0])) <= 2  # float-tol boundary flips

    # ---- bf16 compute path (f32 accumulation) — beneficial on v5e/v6e/v7x ----
    out_bf, _ = my_module_forward(x, mask, weights, biases,
                                  compute_dtype=jnp.bfloat16)
    jax.block_until_ready(out_bf)
    assert jnp.allclose(out_bf, h_ref, atol=5e-2, rtol=5e-2)

    # ---- jitted end-to-end path with a static argwhere size bound ----
    fwd = jax.jit(functools.partial(my_module_forward, weights=weights, biases=biases,
                                    compute_dtype=jnp.float32,
                                    argwhere_size=int(mask.size)))
    out_j, hi_idx_j = fwd(x, mask)
    jax.block_until_ready(hi_idx_j)
    assert jnp.allclose(out_j, out, atol=1e-5)
    n_hits = int((hi_idx_j[:, 0] >= 0).sum())
    assert n_hits == hi_idx.shape[0]

    print("KERNEL_OK")
</pallas_src>

<mosaic_0001>
module attributes {stable_mosaic.version = 11 : i64} {
  func.func @kernel(%arg0: i32, %arg1: memref<256x128xf32, #tpu.memory_space<vmem>>, %arg2: memref<128x128xf32, #tpu.memory_space<vmem>>, %arg3: memref<1x128xf32, #tpu.memory_space<vmem>>, %arg4: memref<128x128xf32, #tpu.memory_space<vmem>>, %arg5: memref<1x128xf32, #tpu.memory_space<vmem>>, %arg6: memref<128x128xf32, #tpu.memory_space<vmem>>, %arg7: memref<1x128xf32, #tpu.memory_space<vmem>>, %arg8: memref<256x128xf32, #tpu.memory_space<vmem>>, %arg9: memref<1x128xf32, #tpu.memory_space<vmem>>) attributes {dimension_semantics = [#tpu.dimension_semantics<parallel>], iteration_bounds = array<i64: 1>, scalar_prefetch = 0 : i64, scratch_operands = 0 : i64, tpu.core_type = #tpu.core_type<tc>, window_params = [{transform_indices = @transform_0, window_bounds = array<i64: 256, 128>}, {pipeline_mode = #tpu.pipeline_mode<synchronous>, transform_indices = @transform_1, window_bounds = array<i64: 128, 128>}, {pipeline_mode = #tpu.pipeline_mode<synchronous>, transform_indices = @transform_2, window_bounds = array<i64: 1, 128>}, {pipeline_mode = #tpu.pipeline_mode<synchronous>, transform_indices = @transform_3, window_bounds = array<i64: 128, 128>}, {pipeline_mode = #tpu.pipeline_mode<synchronous>, transform_indices = @transform_4, window_bounds = array<i64: 1, 128>}, {pipeline_mode = #tpu.pipeline_mode<synchronous>, transform_indices = @transform_5, window_bounds = array<i64: 128, 128>}, {pipeline_mode = #tpu.pipeline_mode<synchronous>, transform_indices = @transform_6, window_bounds = array<i64: 1, 128>}, {transform_indices = @transform_7, window_bounds = array<i64: 256, 128>}, {transform_indices = @transform_8, window_bounds = array<i64: 1, 128>}]} {
    %c0 = arith.constant 0 : index
    %c0_0 = arith.constant 0 : index
    %0 = vector.load %arg1[%c0, %c0_0] : memref<256x128xf32, #tpu.memory_space<vmem>>, vector<256x128xf32>
    %c0_1 = arith.constant 0 : index
    %c0_2 = arith.constant 0 : index
    %1 = vector.load %arg2[%c0_1, %c0_2] : memref<128x128xf32, #tpu.memory_space<vmem>>, vector<128x128xf32>
    %c0_3 = arith.constant 0 : index
    %c0_4 = arith.constant 0 : index
    %2 = vector.load %arg3[%c0_3, %c0_4] : memref<1x128xf32, #tpu.memory_space<vmem>>, vector<1x128xf32>
    %cst = arith.constant dense<0.000000e+00> : vector<256x128xf32>
    %3 = tpu.matmul %0, %1, %cst {dimension_numbers = #tpu.dot_dimension_numbers<[1], [0], [0], [1], [0, 0, 1, 1], [], []>} : vector<256x128xf32>, vector<128x128xf32>, vector<256x128xf32> -> vector<256x128xf32>
    %4 = vector.broadcast %2 : vector<1x128xf32> to vector<256x128xf32>
    %5 = arith.addf %3, %4 : vector<256x128xf32>
    %cst_5 = arith.constant 0.000000e+00 : f32
    %6 = vector.broadcast %cst_5 : f32 to vector<256x128xf32>
    %7 = arith.maximumf %5, %6 : vector<256x128xf32>
    %c0_6 = arith.constant 0 : index
    %c0_7 = arith.constant 0 : index
    %8 = vector.load %arg4[%c0_6, %c0_7] : memref<128x128xf32, #tpu.memory_space<vmem>>, vector<128x128xf32>
    %c0_8 = arith.constant 0 : index
    %c0_9 = arith.constant 0 : index
    %9 = vector.load %arg5[%c0_8, %c0_9] : memref<1x128xf32, #tpu.memory_space<vmem>>, vector<1x128xf32>
    %cst_10 = arith.constant dense<0.000000e+00> : vector<256x128xf32>
    %10 = tpu.matmul %7, %8, %cst_10 {dimension_numbers = #tpu.dot_dimension_numbers<[1], [0], [0], [1], [0, 0, 1, 1], [], []>} : vector<256x128xf32>, vector<128x128xf32>, vector<256x128xf32> -> vector<256x128xf32>
    %11 = vector.broadcast %9 : vector<1x128xf32> to vector<256x128xf32>
    %12 = arith.addf %10, %11 : vector<256x128xf32>
    %cst_11 = arith.constant 0.000000e+00 : f32
    %13 = vector.broadcast %cst_11 : f32 to vector<256x128xf32>
    %14 = arith.maximumf %12, %13 : vector<256x128xf32>
    %c0_12 = arith.constant 0 : index
    %c0_13 = arith.constant 0 : index
    %15 = vector.load %arg6[%c0_12, %c0_13] : memref<128x128xf32, #tpu.memory_space<vmem>>, vector<128x128xf32>
    %c0_14 = arith.constant 0 : index
    %c0_15 = arith.constant 0 : index
    %16 = vector.load %arg7[%c0_14, %c0_15] : memref<1x128xf32, #tpu.memory_space<vmem>>, vector<1x128xf32>
    %cst_16 = arith.constant dense<0.000000e+00> : vector<256x128xf32>
    %17 = tpu.matmul %14, %15, %cst_16 {dimension_numbers = #tpu.dot_dimension_numbers<[1], [0], [0], [1], [0, 0, 1, 1], [], []>} : vector<256x128xf32>, vector<128x128xf32>, vector<256x128xf32> -> vector<256x128xf32>
    %18 = vector.broadcast %16 : vector<1x128xf32> to vector<256x128xf32>
    %19 = arith.addf %17, %18 : vector<256x128xf32>
    %cst_17 = arith.constant 0.000000e+00 : f32
    %20 = vector.broadcast %cst_17 : f32 to vector<256x128xf32>
    %21 = arith.maximumf %19, %20 : vector<256x128xf32>
    %c0_18 = arith.constant 0 : index
    %c0_19 = arith.constant 0 : index
    %22 = vector.load %arg8[%c0_18, %c0_19] : memref<256x128xf32, #tpu.memory_space<vmem>>, vector<256x128xf32>
    tpu.vector_store %arg8[%c0_18, %c0_19], %21 {strides = array<i32>} : memref<256x128xf32, #tpu.memory_space<vmem>>, vector<256x128xf32>,
    %cst_20 = arith.constant dense<0.000000e+00> : vector<128xf32>
    %23 = vector.multi_reduction <add>, %21, %cst_20 [0] : vector<256x128xf32> to vector<128xf32>
    %24 = vector.shape_cast %23 : vector<128xf32> to vector<1x128xf32>
    %c0_21 = arith.constant 0 : index
    %c0_22 = arith.constant 0 : index
    %25 = vector.load %arg9[%c0_21, %c0_22] : memref<1x128xf32, #tpu.memory_space<vmem>>, vector<1x128xf32>
    tpu.vector_store %arg9[%c0_21, %c0_22], %24 {strides = array<i32>} : memref<1x128xf32, #tpu.memory_space<vmem>>, vector<1x128xf32>,
    return
  }
  func.func @transform_0(%arg0: i32) -> (i32, i32) {
    %c0_i32 = arith.constant 0 : i32
    %c0_i32_0 = arith.constant 0 : i32
    return %arg0, %c0_i32 : i32, i32
  }
  func.func @transform_1(%arg0: i32) -> (i32, i32) {
    %c0_i32 = arith.constant 0 : i32
    %c0_i32_0 = arith.constant 0 : i32
    %c0_i32_1 = arith.constant 0 : i32
    return %c0_i32, %c0_i32_0 : i32, i32
  }
  func.func @transform_2(%arg0: i32) -> (i32, i32) {
    %c0_i32 = arith.constant 0 : i32
    %c0_i32_0 = arith.constant 0 : i32
    %c0_i32_1 = arith.constant 0 : i32
    return %c0_i32, %c0_i32_0 : i32, i32
  }
  func.func @transform_3(%arg0: i32) -> (i32, i32) {
    %c0_i32 = arith.constant 0 : i32
    %c0_i32_0 = arith.constant 0 : i32
    %c0_i32_1 = arith.constant 0 : i32
    return %c0_i32, %c0_i32_0 : i32, i32
  }
  func.func @transform_4(%arg0: i32) -> (i32, i32) {
    %c0_i32 = arith.constant 0 : i32
    %c0_i32_0 = arith.constant 0 : i32
    %c0_i32_1 = arith.constant 0 : i32
    return %c0_i32, %c0_i32_0 : i32, i32
  }
  func.func @transform_5(%arg0: i32) -> (i32, i32) {
    %c0_i32 = arith.constant 0 : i32
    %c0_i32_0 = arith.constant 0 : i32
    %c0_i32_1 = arith.constant 0 : i32
    return %c0_i32, %c0_i32_0 : i32, i32
  }
  func.func @transform_6(%arg0: i32) -> (i32, i32) {
    %c0_i32 = arith.constant 0 : i32
    %c0_i32_0 = arith.constant 0 : i32
    %c0_i32_1 = arith.constant 0 : i32
    return %c0_i32, %c0_i32_0 : i32, i32
  }
  func.func @transform_7(%arg0: i32) -> (i32, i32) {
    %c0_i32 = arith.constant 0 : i32
    %c0_i32_0 = arith.constant 0 : i32
    return %arg0, %c0_i32 : i32, i32
  }
  func.func @transform_8(%arg0: i32) -> (i32, i32) {
    %c0_i32 = arith.constant 0 : i32
    %c0_i32_0 = arith.constant 0 : i32
    return %arg0, %c0_i32 : i32, i32
  }
}

</mosaic_0001>

<bundles_post_ra>
// kernel: tpu_custom_call.1
= control target key start
LH: loop header
LB: loop body
LE: loop exit
PB: predicated region body
PF: predicated region fallthrough
CT: control target
= control target key end

     0   :  { %14 = vsyncpa [#allocation3], 0  ;;  %s2001_s0 = inlined_call_operand.hbm [shape: f32[256,128], index: 0, kind: input, shape index: {}]   ;;  %s2002_s1 = inlined_call_operand.hbm [shape: f32[128,128], index: 1, kind: input, shape index: {}]   ;;  %s2003_s2 = inlined_call_operand.vmem [shape: f32[1,128], index: 2, kind: input, shape index: {}]   ;;  %s2004_s3 = inlined_call_operand.hbm [shape: f32[128,128], index: 3, kind: input, shape index: {}]   ;;  %s2005_s4 = inlined_call_operand.vmem [shape: f32[1,128], index: 4, kind: input, shape index: {}]   ;;  %s2006_s5 = inlined_call_operand.hbm [shape: f32[128,128], index: 5, kind: input, shape index: {}]   ;;  %s2007_s6 = inlined_call_operand.vmem [shape: f32[1,128], index: 6, kind: input, shape index: {}]   ;;  %s2008_s7 = inlined_call_operand.hbm [shape: f32[256,128], index: 7, kind: output, shape index: {0}]   ;;  %s2009_s8 = inlined_call_operand.hbm [shape: f32[1,128], index: 8, kind: output, shape index: {1}]  }
   0x1   :  { %15 = vsyncpa [#allocation6], 0 }
   0x2   :  { %16 = vsyncpa [#allocation9], 0 }
   0x3   :  { %17 = vsyncpa [#allocation4], 0 }
   0x4   :  { %18 = vsyncpa [#allocation12], 0  ;;  %s1709_s27 = smov [#allocation5]   ;;  %s1710_s29 = smov [#allocation2]  }
   0x5   :  { %s36_s28 = sshll.u32 %s1709_s27, 4  ;;  %s24_s30 = sshll.u32 %s1710_s29, 4  ;;  %s37_s28 = int_to_ptr.vmem [resolvable:$true] %s36_s28  ;;  %s1762_s30 = int_to_ptr.vmem [resolvable:$true] %s24_s30 }
   0x6   :  { %s1567_s11 = scalar_lea.hbm %s2002_s1, 2048 }
   0x7   :  { %p1568_p0 = scmp.ne.s32.totalorder %s2002_s1, %s1567_s11  ;;  %p1571_p1 = scmp.lt.u32.totalorder %s1567_s11, %s2002_s1 }
   0x9   :  { %p1573_p2 = pnand %p1571_p1, %p1568_p0 }
   0xb   :  { %1576 = shalt.err (!%p1573_p2)
}
   0xc   :  { %s1577_s16 = scalar_lea.vmem %s37_s28, 2048  ;;  %p1582_p4 = scmp.lt.s32.totalorder %s37_s28, %s37_s28 }
   0xd   :  { %p1578_p3 = scmp.ne.s32.totalorder %s37_s28, %s1577_s16  ;;  %p1583_p5 = scmp.lt.s32.totalorder %s1577_s16, %s1577_s16 }
   0xf   :  { %p1584_p6 = por %p1583_p5, %p1582_p4 }
  0x11   :  { %p1585_p7 = pnand %p1584_p6, %p1578_p3 }
  0x13   :  { %1588 = shalt.err (!%p1585_p7)
}
  0x14   :  { %s1711_s17 = smov 128   ;;  %s1712_s18 = smov 8  }
  0x15   :  { %42 = dma.hbm_to_vmem [thread:$0]  %s2002_s1, 2048, %s37_s28, [#allocation6], %s1711_s17, %s1711_s17, %s1712_s18  }
  0x16   :  { %s1589_s23 = scalar_lea.hbm %s2001_s0, 4096 }
  0x17   :  { %p1590_p8 = scmp.ne.s32.totalorder %s2001_s0, %s1589_s23  ;;  %p1593_p9 = scmp.lt.u32.totalorder %s1589_s23, %s2001_s0 }
  0x19   :  { %p1595_p10 = pnand %p1593_p9, %p1590_p8 }
  0x1b   :  { %1598 = shalt.err (!%p1595_p10)
}
  0x1c   :  { %s1599_s29 = scalar_lea.vmem %s1762_s30, 4096  ;;  %p1604_p12 = scmp.lt.s32.totalorder %s1762_s30, %s1762_s30 }
  0x1d   :  { %p1600_p11 = scmp.ne.s32.totalorder %s1762_s30, %s1599_s29  ;;  %p1605_p13 = scmp.lt.s32.totalorder %s1599_s29, %s1599_s29 }
  0x1f   :  { %p1606_p0 = por %p1605_p13, %p1604_p12 }
  0x21   :  { %p1607_p1 = pnand %p1606_p0, %p1600_p11 }
  0x23   :  { %1610 = shalt.err (!%p1607_p1)
}
  0x24   :  { %30 = dma.hbm_to_vmem [thread:$0]  %s2001_s0, 4096, %s1762_s30, [#allocation3], %s1711_s17, %s1711_s17, %s1712_s18  }
  0x25   :  { %s1713_s9 = smov [#allocation7]   ;;  %s1714_s11 = smov [#allocation8]  }
  0x26   :  { %s50_s10 = sshll.u32 %s1713_s9, 4  ;;  %s64_s12 = sshll.u32 %s1714_s11, 4  ;;  %s51_s10 = int_to_ptr.vmem [resolvable:$true] %s50_s10  ;;  %s1799_s12 = int_to_ptr.vmem [resolvable:$true] %s64_s12 }
  0x27   :  { %s1611_s15 = scalar_lea.hbm %s2004_s3, 2048 }
  0x28   :  { %p1612_p2 = scmp.ne.s32.totalorder %s2004_s3, %s1611_s15  ;;  %p1615_p3 = scmp.lt.u32.totalorder %s1611_s15, %s2004_s3 }
  0x2a   :  { %p1617_p4 = pnand %p1615_p3, %p1612_p2 }
  0x2c   :  { %1620 = shalt.err (!%p1617_p4)
}
  0x2d   :  { %s1621_s0 = scalar_lea.vmem %s51_s10, 2048  ;;  %p1626_p6 = scmp.lt.s32.totalorder %s51_s10, %s51_s10 }
  0x2e   :  { %p1622_p5 = scmp.ne.s32.totalorder %s51_s10, %s1621_s0  ;;  %p1627_p7 = scmp.lt.s32.totalorder %s1621_s0, %s1621_s0 }
  0x30   :  { %p1628_p8 = por %p1627_p7, %p1626_p6 }
  0x32   :  { %p1629_p9 = pnand %p1628_p8, %p1622_p5 }
  0x34   :  { %1632 = shalt.err (!%p1629_p9)
}
  0x35   :  { %56 = dma.hbm_to_vmem [thread:$0]  %s2004_s3, 2048, %s51_s10, [#allocation6], %s1711_s17, %s1711_s17, %s1712_s18  }
  0x36   :  { %s1633_s25 = scalar_lea.hbm %s2006_s5, 2048 }
  0x37   :  { %p1634_p10 = scmp.ne.s32.totalorder %s2006_s5, %s1633_s25  ;;  %p1637_p11 = scmp.lt.u32.totalorder %s1633_s25, %s2006_s5 }
  0x39   :  { %p1639_p12 = pnand %p1637_p11, %p1634_p10 }
  0x3b   :  { %1642 = shalt.err (!%p1639_p12)
}
  0x3c   :  { %s1643_s28 = scalar_lea.vmem %s1799_s12, 2048  ;;  %p1648_p0 = scmp.lt.s32.totalorder %s1799_s12, %s1799_s12 }
  0x3d   :  { %p1644_p13 = scmp.ne.s32.totalorder %s1799_s12, %s1643_s28  ;;  %p1649_p1 = scmp.lt.s32.totalorder %s1643_s28, %s1643_s28 }
  0x3f   :  { %p1650_p2 = por %p1649_p1, %p1648_p0 }
  0x41   :  { %p1651_p3 = pnand %p1650_p2, %p1644_p13 }
  0x43   :  { %1654 = shalt.err (!%p1651_p3)
}
  0x44   :  { %70 = dma.hbm_to_vmem [thread:$0]  %s2006_s5, 2048, %s1799_s12, [#allocation9], %s1711_s17, %s1711_s17, %s1712_s18  }
  0x45   :  { %1699 = dma.done.wait [#allocation3], 4096  }
  0x46   :  { %1700 = vsyncadd [#allocation3], 4294963200 }
  0x47   :  { %1701 = dma.done.wait [#allocation6], 4096  }
  0x48   :  { %1702 = vsyncadd [#allocation6], 4294963200 }
  0x49   :  { %1703 = dma.done.wait [#allocation9], 2048  }
  0x4a   :  { %1704 = vsyncadd [#allocation9], 4294965248  ;;  %v117_v0 = vld [vmem:[#allocation5] sm:$0xff]  ;;  %v118_v1 = vld [vmem:[#allocation5 + $0x8] sm:$0xff] }
  0x4b   :  { %v119_v2 = vld [vmem:[#allocation5 + $0x10] sm:$0xff]  ;;  %v1447_v3 = vpack.c.bf16 %v118_v1, %v117_v0  ;;  %v120_v4 = vld [vmem:[#allocation5 + $0x18] sm:$0xff]  ;;  %v121_v6 = vld [vmem:[#allocation5 + $0x20] sm:$0xff] }
  0x4c   :  { %v1451_v5 = vpack.c.bf16 %v120_v4, %v119_v2  ;;  %v122_v7 = vld [vmem:[#allocation5 + $0x28] sm:$0xff]  ;;  %v85_v9 = vld [vmem:[#allocation2] sm:$0xff]  ;;  %v123_v10 = vld [vmem:[#allocation5 + $0x30] sm:$0xff] }
  0x4d   :  { %1448 = vmatprep.subr.bf16.mxu0 %v1447_v3  ;;  %1543 = vmatprep.subr.bf16.mxu1 %v1447_v3  ;;  %v1455_v8 = vpack.c.bf16 %v122_v7, %v121_v6  ;;  %v124_v11 = vld [vmem:[#allocation5 + $0x38] sm:$0xff]  ;;  %v125_v13 = vld [vmem:[#allocation5 + $0x40] sm:$0xff]  ;;  %v126_v14 = vld [vmem:[#allocation5 + $0x48] sm:$0xff] }
  0x4e   :  { %1450 = vmatpush3.bf16.msra.mxu0 %v1447_v3  ;;  %1551 = vmatpush3.bf16.msra.mxu1 %v1447_v3  ;;  %v1459_v12 = vpack.c.bf16 %v124_v11, %v123_v10  ;;  %v101_v15 = vld [vmem:[#allocation2 + $0x80] sm:$0xff]  ;;  %v1463_v16 = vpack.c.bf16 %v126_v14, %v125_v13  ;;  %v127_v17 = vld [vmem:[#allocation5 + $0x50] sm:$0xff]  ;;  %v128_v18 = vld [vmem:[#allocation5 + $0x58] sm:$0xff] }
  0x4f   :  { %1452 = vmatprep.subr.bf16.mxu0 %v1451_v5  ;;  %1544 = vmatprep.subr.bf16.mxu1 %v1451_v5  ;;  %v1467_v19 = vpack.c.bf16 %v128_v18, %v127_v17  ;;  %v129_v20 = vld [vmem:[#allocation5 + $0x60] sm:$0xff]  ;;  %v130_v21 = vld [vmem:[#allocation5 + $0x68] sm:$0xff]  ;;  %v131_v23 = vld [vmem:[#allocation5 + $0x70] sm:$0xff] }
  0x50   :  { %1239 = vmatprep.mubr.f32.mxu0 %v85_v9  ;;  %1263 = vmatprep.mubr.f32.mxu1 %v101_v15  ;;  %v1471_v22 = vpack.c.bf16 %v130_v21, %v129_v20  ;;  %v132_v24 = vld [vmem:[#allocation5 + $0x78] sm:$0xff]  ;;  %v397_v26 = vld [vmem:[#allocation7] sm:$0xff]  ;;  %v398_v27 = vld [vmem:[#allocation7 + $0x8] sm:$0xff] }
  0x51   :  { %v1475_v25 = vpack.c.bf16 %v132_v24, %v131_v23  ;;  %v1479_v28 = vpack.c.bf16 %v398_v27, %v397_v26  ;;  %v399_v29 = vld [vmem:[#allocation7 + $0x10] sm:$0xff]  ;;  %v400_v30 = vld [vmem:[#allocation7 + $0x18] sm:$0xff]  ;;  %v86_v31 = vld [vmem:[#allocation2 + $0x8] sm:$0xff] }
  0x52   :  { %1454 = vmatpush3.bf16.msra.mxu0 %v1451_v5  ;;  %1552 = vmatpush3.bf16.msra.mxu1 %v1451_v5  ;;  %v102_v32 = vld [vmem:[#allocation2 + $0x88] sm:$0xff]  ;;  %v87_v33 = vld [vmem:[#allocation2 + $0x10] sm:$0xff]  ;;  %v1483_v35 = vpack.c.bf16 %v400_v30, %v399_v29  ;;  %v401_v36 = vld [vmem:[#allocation7 + $0x20] sm:$0xff] }
  0x53   :  { %1456 = vmatprep.subr.bf16.mxu0 %v1455_v8  ;;  %1545 = vmatprep.subr.bf16.mxu1 %v1455_v8  ;;  %v103_v34 = vld [vmem:[#allocation2 + $0x90] sm:$0xff]  ;;  %v402_v37 = vld [vmem:[#allocation7 + $0x28] sm:$0xff]  ;;  %v88_v38 = vld [vmem:[#allocation2 + $0x18] sm:$0xff] }
  0x54   :  { %v104_v39 = vld [vmem:[#allocation2 + $0x98] sm:$0xff]  ;;  %v89_v40 = vld [vmem:[#allocation2 + $0x20] sm:$0xff]  ;;  %v1487_v42 = vpack.c.bf16 %v402_v37, %v401_v36  ;;  %v403_v43 = vld [vmem:[#allocation7 + $0x30] sm:$0xff] }
  0x55   :  { %v105_v41 = vld [vmem:[#allocation2 + $0xa0] sm:$0xff]  ;;  %v404_v44 = vld [vmem:[#allocation7 + $0x38] sm:$0xff]  ;;  %v90_v45 = vld [vmem:[#allocation2 + $0x28] sm:$0xff] }
  0x56   :  { %1458 = vmatpush3.bf16.msra.mxu0 %v1455_v8  ;;  %1553 = vmatpush3.bf16.msra.mxu1 %v1455_v8  ;;  %v106_v46 = vld [vmem:[#allocation2 + $0xa8] sm:$0xff]  ;;  %v91_v47 = vld [vmem:[#allocation2 + $0x30] sm:$0xff]  ;;  %v1491_v49 = vpack.c.bf16 %v404_v44, %v403_v43  ;;  %v405_v50 = vld [vmem:[#allocation7 + $0x40] sm:$0xff] }
  0x57   :  { %1460 = vmatprep.subr.bf16.mxu0 %v1459_v12  ;;  %1546 = vmatprep.subr.bf16.mxu1 %v1459_v12  ;;  %v107_v48 = vld [vmem:[#allocation2 + $0xb0] sm:$0xff]  ;;  %v406_v51 = vld [vmem:[#allocation7 + $0x48] sm:$0xff]  ;;  %v92_v52 = vld [vmem:[#allocation2 + $0x38] sm:$0xff] }
  0x58   :  { %v108_v53 = vld [vmem:[#allocation2 + $0xb8] sm:$0xff]  ;;  %v93_v54 = vld [vmem:[#allocation2 + $0x40] sm:$0xff]  ;;  %v1495_v56 = vpack.c.bf16 %v406_v51, %v405_v50  ;;  %v407_v57 = vld [vmem:[#allocation7 + $0x50] sm:$0xff] }
  0x59   :  { %v109_v55 = vld [vmem:[#allocation2 + $0xc0] sm:$0xff]  ;;  %v408_v58 = vld [vmem:[#allocation7 + $0x58] sm:$0xff]  ;;  %v94_v59 = vld [vmem:[#allocation2 + $0x48] sm:$0xff] }
  0x5a   :  { %1462 = vmatpush3.bf16.msra.mxu0 %v1459_v12  ;;  %1554 = vmatpush3.bf16.msra.mxu1 %v1459_v12  ;;  %v110_v60 = vld [vmem:[#allocation2 + $0xc8] sm:$0xff]  ;;  %v95_v61 = vld [vmem:[#allocation2 + $0x50] sm:$0xff]  ;;  %v1499_v63 = vpack.c.bf16 %v408_v58, %v407_v57  ;;  %v409_v0 = vld [vmem:[#allocation7 + $0x60] sm:$0xff] }
  0x5b   :  { %1464 = vmatprep.subr.bf16.mxu0 %v1463_v16  ;;  %1547 = vmatprep.subr.bf16.mxu1 %v1463_v16  ;;  %v111_v62 = vld [vmem:[#allocation2 + $0xd0] sm:$0xff]  ;;  %v410_v1 = vld [vmem:[#allocation7 + $0x68] sm:$0xff]  ;;  %v96_v2 = vld [vmem:[#allocation2 + $0x58] sm:$0xff] }
  0x5c   :  { %v112_v3 = vld [vmem:[#allocation2 + $0xd8] sm:$0xff]  ;;  %v97_v4 = vld [vmem:[#allocation2 + $0x60] sm:$0xff]  ;;  %v1503_v6 = vpack.c.bf16 %v410_v1, %v409_v0  ;;  %v98_v7 = vld [vmem:[#allocation2 + $0x68] sm:$0xff] }
  0x5d   :  { %v113_v5 = vld [vmem:[#allocation2 + $0xe0] sm:$0xff]  ;;  %v114_v8 = vld [vmem:[#allocation2 + $0xe8] sm:$0xff]  ;;  %v99_v9 = vld [vmem:[#allocation2 + $0x70] sm:$0xff] }
  0x5e   :  { %1466 = vmatpush3.bf16.msra.mxu0 %v1463_v16  ;;  %1555 = vmatpush3.bf16.msra.mxu1 %v1463_v16  ;;  %v115_v10 = vld [vmem:[#allocation2 + $0xf0] sm:$0xff]  ;;  %v100_v11 = vld [vmem:[#allocation2 + $0x78] sm:$0xff]  ;;  %v677_v16 = vld [vmem:[#allocation8] sm:$0xff] }
  0x5f   :  { %1468 = vmatprep.subr.bf16.mxu0 %v1467_v19  ;;  %1548 = vmatprep.subr.bf16.mxu1 %v1467_v19  ;;  %v116_v12 = vld [vmem:[#allocation2 + $0xf8] sm:$0xff]  ;;  %v411_v13 = vld [vmem:[#allocation7 + $0x70] sm:$0xff]  ;;  %v678_v17 = vld [vmem:[#allocation8 + $0x8] sm:$0xff] }
  0x60   :  { %v412_v14 = vld [vmem:[#allocation7 + $0x78] sm:$0xff]  ;;  %v679_v18 = vld [vmem:[#allocation8 + $0x10] sm:$0xff]  ;;  %v682_v23 = vld [vmem:[#allocation8 + $0x28] sm:$0xff] }
  0x61   :  { %v1507_v15 = vpack.c.bf16 %v412_v14, %v411_v13  ;;  %v680_v20 = vld [vmem:[#allocation8 + $0x18] sm:$0xff]  ;;  %v686_v29 = vld [vmem:[#allocation8 + $0x48] sm:$0xff]  ;;  %v1839_v37 = vld [vmem:[%s2003_s2] ss:$0 sm:$0xff] }
  0x62   :  { %1470 = vmatpush3.bf16.msra.mxu0 %v1467_v19  ;;  %1556 = vmatpush3.bf16.msra.mxu1 %v1467_v19  ;;  %v1511_v19 = vpack.c.bf16 %v678_v17, %v677_v16  ;;  %v1515_v21 = vpack.c.bf16 %v680_v20, %v679_v18  ;;  %v684_v26 = vld [vmem:[#allocation8 + $0x38] sm:$0xff] }
  0x63   :  { %1472 = vmatprep.subr.bf16.mxu0 %v1471_v22  ;;  %1549 = vmatprep.subr.bf16.mxu1 %v1471_v22 }
  0x66   :  { %1474 = vmatpush3.bf16.msra.mxu0 %v1471_v22  ;;  %1557 = vmatpush3.bf16.msra.mxu1 %v1471_v22  ;;  %v681_v22 = vld [vmem:[#allocation8 + $0x20] sm:$0xff] }
  0x67   :  { %1476 = vmatprep.subr.bf16.mxu0 %v1475_v25  ;;  %1550 = vmatprep.subr.bf16.mxu1 %v1475_v25  ;;  %v1519_v24 = vpack.c.bf16 %v682_v23, %v681_v22 }
  0x6a   :  { %1478 = vmatpush3.bf16.msra.mxu0 %v1475_v25  ;;  %1558 = vmatpush3.bf16.msra.mxu1 %v1475_v25  ;;  %v683_v25 = vld [vmem:[#allocation8 + $0x30] sm:$0xff] }
  0x6b   :  { %1480 = vmatprep.subr.bf16.mxu1 %v1479_v28  ;;  %1512 = vmatprep.subr.bf16.mxu0 %v1511_v19  ;;  %v1523_v27 = vpack.c.bf16 %v684_v26, %v683_v25 }
  0x6d   :  { %1240 = vmatmul.mubr.f32.vlgmr.msra.gmra.mrb[0].mxu0 %v86_v31  ;;  %1264 = vmatmul.mubr.f32.vlgmr.msra.gmra.mrb[0].mxu1 %v102_v32  ;;  %v687_v31 = vld [vmem:[#allocation8 + $0x50] sm:$0xff]  ;;  %v688_v32 = vld [vmem:[#allocation8 + $0x58] sm:$0xff] }
  0x6e   :  { %1242 = vmatprep.mubr.f32.mxu0 %v87_v33  ;;  %1266 = vmatprep.mubr.f32.mxu1 %v103_v34  ;;  %v1531_v33 = vpack.c.bf16 %v688_v32, %v687_v31  ;;  %v689_v34 = vld [vmem:[#allocation8 + $0x60] sm:$0xff] }
  0x6f   :  { %1482 = vmatpush3.bf16.msra.mxu1 %v1479_v28  ;;  %1514 = vmatpush3.bf16.msra.mxu0 %v1511_v19  ;;  %v685_v28 = vld [vmem:[#allocation8 + $0x40] sm:$0xff] }
  0x70   :  { %1484 = vmatprep.subr.bf16.mxu1 %v1483_v35  ;;  %1516 = vmatprep.subr.bf16.mxu0 %v1515_v21  ;;  %v1527_v30 = vpack.c.bf16 %v686_v29, %v685_v28 }
  0x71   :  { %1243 = vmatmul.mubr.f32.gmra.mrb[2].mxu0 %v88_v38  ;;  %1267 = vmatmul.mubr.f32.gmra.mrb[2].mxu1 %v104_v39 }
  0x72   :  { %1245 = vmatprep.mubr.f32.mxu0 %v89_v40  ;;  %1269 = vmatprep.mubr.f32.mxu1 %v105_v41 }
  0x73   :  { %1486 = vmatpush3.bf16.msra.mxu1 %v1483_v35  ;;  %1518 = vmatpush3.bf16.msra.mxu0 %v1515_v21  ;;  %v690_v35 = vld [vmem:[#allocation8 + $0x68] sm:$0xff] }
  0x74   :  { %1488 = vmatprep.subr.bf16.mxu1 %v1487_v42  ;;  %1520 = vmatprep.subr.bf16.mxu0 %v1519_v24  ;;  %v1535_v36 = vpack.c.bf16 %v690_v35, %v689_v34 }
  0x75   :  { %1246 = vmatmul.mubr.f32.gmra.mrb[4].mxu0 %v90_v45  ;;  %1270 = vmatmul.mubr.f32.gmra.mrb[4].mxu1 %v106_v46 }
  0x76   :  { %1248 = vmatprep.mubr.f32.mxu0 %v91_v47  ;;  %1272 = vmatprep.mubr.f32.mxu1 %v107_v48 }
  0x77   :  { %1490 = vmatpush3.bf16.msra.mxu1 %v1487_v42  ;;  %1522 = vmatpush3.bf16.msra.mxu0 %v1519_v24 }
  0x78   :  { %1492 = vmatprep.subr.bf16.mxu1 %v1491_v49  ;;  %1524 = vmatprep.subr.bf16.mxu0 %v1523_v27 }
  0x79   :  { %1249 = vmatmul.mubr.f32.gmra.mrb[6].mxu0 %v92_v52  ;;  %1273 = vmatmul.mubr.f32.gmra.mrb[6].mxu1 %v108_v53 }
  0x7a   :  { %1251 = vmatprep.mubr.f32.mxu0 %v93_v54  ;;  %1275 = vmatprep.mubr.f32.mxu1 %v109_v55 }
  0x7b   :  { %1494 = vmatpush3.bf16.msra.mxu1 %v1491_v49  ;;  %1526 = vmatpush3.bf16.msra.mxu0 %v1523_v27 }
  0x7c   :  { %1496 = vmatprep.subr.bf16.mxu1 %v1495_v56  ;;  %1528 = vmatprep.subr.bf16.mxu0 %v1527_v30 }
  0x7d   :  { %1252 = vmatmul.mubr.f32.gmra.mrb[8].mxu0 %v94_v59  ;;  %1276 = vmatmul.mubr.f32.gmra.mrb[8].mxu1 %v110_v60 }
  0x7e   :  { %1254 = vmatprep.mubr.f32.mxu0 %v95_v61  ;;  %1278 = vmatprep.mubr.f32.mxu1 %v111_v62 }
  0x7f   :  { %1498 = vmatpush3.bf16.msra.mxu1 %v1495_v56  ;;  %1530 = vmatpush3.bf16.msra.mxu0 %v1527_v30 }
  0x80   :  { %1500 = vmatprep.subr.bf16.mxu1 %v1499_v63  ;;  %1532 = vmatprep.subr.bf16.mxu0 %v1531_v33 }
  0x81   :  { %1255 = vmatmul.mubr.f32.gmra.mrb[10].mxu0 %v96_v2  ;;  %1279 = vmatmul.mubr.f32.gmra.mrb[10].mxu1 %v112_v3 }
  0x82   :  { %1257 = vmatprep.mubr.f32.mxu0 %v97_v4  ;;  %1281 = vmatprep.mubr.f32.mxu1 %v113_v5 }
  0x83   :  { %1502 = vmatpush3.bf16.msra.mxu1 %v1499_v63  ;;  %1534 = vmatpush3.bf16.msra.mxu0 %v1531_v33 }
  0x84   :  { %1504 = vmatprep.subr.bf16.mxu1 %v1503_v6  ;;  %1536 = vmatprep.subr.bf16.mxu0 %v1535_v36 }
  0x85   :  { %1258 = vmatmul.mubr.f32.gmra.mrb[12].mxu0 %v98_v7  ;;  %1282 = vmatmul.mubr.f32.gmra.mrb[12].mxu1 %v114_v8 }
  0x86   :  { %1260 = vmatprep.mubr.f32.mxu0 %v99_v9  ;;  %1284 = vmatprep.mubr.f32.mxu1 %v115_v10 }
  0x87   :  { %1506 = vmatpush3.bf16.msra.mxu1 %v1503_v6  ;;  %1538 = vmatpush3.bf16.msra.mxu0 %v1535_v36 }
  0x88   :  { %1508 = vmatprep.subr.bf16.mxu1 %v1507_v15 }
  0x89   :  { %1261 = vmatmul.mubr.f32.gmra.mrb[14].mxu0 %v100_v11  ;;  %1285 = vmatmul.mubr.f32.gmra.mrb[14].mxu1 %v116_v12 }
  0x8b   :  { %1510 = vmatpush3.bf16.msra.mxu1 %v1507_v15 }
 0x140   :  { %v1241_v38 = vpop.f32.mrb[0].mxu0  ;;  %v1841_v39 = vpop.f32.mrb[0].mxu1 }
 0x141   :  { %v212_v40 = vadd.f32 %v1241_v38, %v1839_v37  ;;  %v206_v41 = vpop.f32.mrb[1].mxu0  ;;  %v1844_v42 = vpop.f32.mrb[1].mxu1 }
 0x142   :  { %v207_v43 = vadd.f32 %v1839_v37, %v206_v41  ;;  %v287_v30 = vadd.f32 %v1839_v37, %v1844_v42 }
 0x143   :  { %v366_v47 = vmax.f32 %v212_v40, 0.0 }
 0x144   :  { %v365_v44 = vmax.f32 %v207_v43, 0.0  ;;  %v1244_v45 = vpop.f32.mrb[2].mxu0  ;;  %v1847_v46 = vpop.f32.mrb[2].mxu1  ;;  %v381_v40 = vmax.f32 %v287_v30, 0.0 }
 0x145   :  { %v222_v48 = vadd.f32 %v1244_v45, %v1839_v37  ;;  %v216_v49 = vpop.f32.mrb[3].mxu0  ;;  %v1850_v50 = vpop.f32.mrb[3].mxu1 }
 0x146   :  { %v217_v51 = vadd.f32 %v1839_v37, %v216_v49  ;;  %1319 = vmatprep.mubr.f32.mxu1 %v365_v44  ;;  %v297_v41 = vadd.f32 %v1839_v37, %v1850_v50  ;;  %v292_v44 = vadd.f32 %v1841_v39, %v1839_v37 }
 0x147   :  { %1320 = vmatmul.mubr.f32.vlgmr.msra.gmra.mrb[16].mxu1 %v366_v47  ;;  %v368_v55 = vmax.f32 %v222_v48, 0.0  ;;  %v302_v48 = vadd.f32 %v1847_v46, %v1839_v37 }
 0x148   :  { %v367_v52 = vmax.f32 %v217_v51, 0.0  ;;  %v1247_v53 = vpop.f32.mrb[4].mxu0  ;;  %v1853_v54 = vpop.f32.mrb[4].mxu1  ;;  %v383_v42 = vmax.f32 %v297_v41, 0.0  ;;  %v382_v47 = vmax.f32 %v292_v44, 0.0 }
 0x149   :  { %v232_v56 = vadd.f32 %v1247_v53, %v1839_v37  ;;  %v226_v57 = vpop.f32.mrb[5].mxu0  ;;  %v1856_v58 = vpop.f32.mrb[5].mxu1  ;;  %v384_v51 = vmax.f32 %v302_v48, 0.0  ;;  %v312_v39 = vadd.f32 %v1853_v54, %v1839_v37 }
 0x14a   :  { %v227_v59 = vadd.f32 %v1839_v37, %v226_v57  ;;  %1322 = vmatprep.mubr.f32.mxu1 %v367_v52  ;;  %v307_v45 = vadd.f32 %v1839_v37, %v1856_v58 }
 0x14b   :  { %1323 = vmatmul.mubr.f32.gmra.mrb[18].mxu1 %v368_v55  ;;  %v370_v63 = vmax.f32 %v232_v56, 0.0  ;;  %v386_v55 = vmax.f32 %v312_v39, 0.0 }
 0x14c   :  { %v369_v60 = vmax.f32 %v227_v59, 0.0  ;;  %v1250_v61 = vpop.f32.mrb[6].mxu0  ;;  %v1859_v62 = vpop.f32.mrb[6].mxu1  ;;  %v385_v49 = vmax.f32 %v307_v45, 0.0 }
 0x14d   :  { %v242_v0 = vadd.f32 %v1250_v61, %v1839_v37  ;;  %v236_v1 = vpop.f32.mrb[7].mxu0  ;;  %v316_v2 = vpop.f32.mrb[7].mxu1  ;;  %v322_v56 = vadd.f32 %v1859_v62, %v1839_v37 }
 0x14e   :  { %v237_v3 = vadd.f32 %v1839_v37, %v236_v1  ;;  %1325 = vmatprep.mubr.f32.mxu1 %v369_v60  ;;  %v317_v50 = vadd.f32 %v1839_v37, %v316_v2 }
 0x14f   :  { %1326 = vmatmul.mubr.f32.gmra.mrb[20].mxu1 %v370_v63  ;;  %v372_v7 = vmax.f32 %v242_v0, 0.0  ;;  %v388_v58 = vmax.f32 %v322_v56, 0.0 }
 0x150   :  { %v371_v4 = vmax.f32 %v237_v3, 0.0  ;;  %v1253_v5 = vpop.f32.mrb[8].mxu0  ;;  %v1863_v6 = vpop.f32.mrb[8].mxu1  ;;  %v387_v52 = vmax.f32 %v317_v50, 0.0 }
 0x151   :  { %v252_v8 = vadd.f32 %v1253_v5, %v1839_v37  ;;  %v246_v9 = vpop.f32.mrb[9].mxu0  ;;  %v326_v10 = vpop.f32.mrb[9].mxu1  ;;  %v332_v59 = vadd.f32 %v1863_v6, %v1839_v37 }
 0x152   :  { %v247_v11 = vadd.f32 %v1839_v37, %v246_v9  ;;  %1328 = vmatprep.mubr.f32.mxu1 %v371_v4  ;;  %v327_v53 = vadd.f32 %v1839_v37, %v326_v10  ;;  %v1903_v10 = vld [vmem:[%s2005_s4] ss:$0 sm:$0xff] }
 0x153   :  { %1329 = vmatmul.mubr.f32.gmra.mrb[22].mxu1 %v372_v7  ;;  %v374_v15 = vmax.f32 %v252_v8, 0.0  ;;  %v390_v61 = vmax.f32 %v332_v59, 0.0  ;;  %v691_v7 = vld [vmem:[#allocation8 + $0x70] sm:$0xff]  ;;  %v692_v8 = vld [vmem:[#allocation8 + $0x78] sm:$0xff] }
 0x154   :  { %v373_v12 = vmax.f32 %v247_v11, 0.0  ;;  %v1256_v13 = vpop.f32.mrb[10].mxu0  ;;  %v1867_v14 = vpop.f32.mrb[10].mxu1  ;;  %v389_v46 = vmax.f32 %v327_v53, 0.0  ;;  %v1539_v9 = vpack.c.bf16 %v692_v8, %v691_v7 }
 0x155   :  { %v262_v16 = vadd.f32 %v1256_v13, %v1839_v37  ;;  %v256_v17 = vpop.f32.mrb[11].mxu0  ;;  %v336_v18 = vpop.f32.mrb[11].mxu1  ;;  %v342_v63 = vadd.f32 %v1867_v14, %v1839_v37 }
 0x156   :  { %v257_v19 = vadd.f32 %v1839_v37, %v256_v17  ;;  %1331 = vmatprep.mubr.f32.mxu1 %v373_v12  ;;  %v337_v57 = vadd.f32 %v1839_v37, %v336_v18  ;;  %1540 = vmatprep.subr.bf16.mxu0 %v1539_v9 }
 0x157   :  { %1332 = vmatmul.mubr.f32.gmra.mrb[24].mxu1 %v374_v15  ;;  %v376_v23 = vmax.f32 %v262_v16, 0.0  ;;  %v392_v1 = vmax.f32 %v342_v63, 0.0  ;;  %1542 = vmatpush3.bf16.msra.mxu0 %v1539_v9 }
 0x158   :  { %v375_v20 = vmax.f32 %v257_v19, 0.0  ;;  %v1259_v21 = vpop.f32.mrb[12].mxu0  ;;  %v1283_v22 = vpop.f32.mrb[12].mxu1  ;;  %v391_v54 = vmax.f32 %v337_v57, 0.0 }
 0x159   :  { %v272_v24 = vadd.f32 %v1259_v21, %v1839_v37  ;;  %v266_v25 = vpop.f32.mrb[13].mxu0  ;;  %v346_v26 = vpop.f32.mrb[13].mxu1  ;;  %v352_v2 = vadd.f32 %v1283_v22, %v1839_v37 }
 0x15a   :  { %v267_v27 = vadd.f32 %v1839_v37, %v266_v25  ;;  %1334 = vmatprep.mubr.f32.mxu1 %v375_v20  ;;  %v347_v60 = vadd.f32 %v1839_v37, %v346_v26 }
 0x15b   :  { %1335 = vmatmul.mubr.f32.gmra.mrb[26].mxu1 %v376_v23  ;;  %v378_v32 = vmax.f32 %v272_v24, 0.0  ;;  %v394_v4 = vmax.f32 %v352_v2, 0.0 }
 0x15c   :  { %v377_v28 = vmax.f32 %v267_v27, 0.0  ;;  %v1262_v29 = vpop.f32.mrb[14].mxu0  ;;  %v1286_v31 = vpop.f32.mrb[14].mxu1  ;;  %v393_v62 = vmax.f32 %v347_v60, 0.0 }
 0x15d   :  { %v282_v33 = vadd.f32 %v1262_v29, %v1839_v37  ;;  %v276_v34 = vpop.f32.mrb[15].mxu0  ;;  %v356_v35 = vpop.f32.mrb[15].mxu1  ;;  %v362_v5 = vadd.f32 %v1286_v31, %v1839_v37 }
 0x15e   :  { %v277_v36 = vadd.f32 %v1839_v37, %v276_v34  ;;  %1337 = vmatprep.mubr.f32.mxu1 %v377_v28  ;;  %v357_v0 = vadd.f32 %v1839_v37, %v356_v35 }
 0x15f   :  { %1338 = vmatmul.mubr.f32.gmra.mrb[28].mxu1 %v378_v32  ;;  %v380_v43 = vmax.f32 %v282_v33, 0.0  ;;  %v396_v6 = vmax.f32 %v362_v5, 0.0 }
 0x160   :  { %v379_v38 = vmax.f32 %v277_v36, 0.0  ;;  %v395_v3 = vmax.f32 %v357_v0, 0.0 }
 0x162   :  { %1340 = vmatprep.mubr.f32.mxu1 %v379_v38 }
 0x163   :  { %1341 = vmatmul.mubr.f32.gmra.mrb[30].mxu1 %v380_v43 }
 0x164   :  { %1343 = vmatprep.mubr.f32.mxu1 %v381_v40 }
 0x167   :  { %1344 = vmatmul.mubr.f32.gmra.mrb[32].mxu1 %v382_v47 }
 0x168   :  { %1346 = vmatprep.mubr.f32.mxu1 %v383_v42 }
 0x16b   :  { %1347 = vmatmul.mubr.f32.gmra.mrb[34].mxu1 %v384_v51 }
 0x16c   :  { %1349 = vmatprep.mubr.f32.mxu1 %v385_v49 }
 0x16f   :  { %1350 = vmatmul.mubr.f32.gmra.mrb[36].mxu1 %v386_v55 }
 0x170   :  { %1352 = vmatprep.mubr.f32.mxu1 %v387_v52 }
 0x173   :  { %1353 = vmatmul.mubr.f32.gmra.mrb[38].mxu1 %v388_v58 }
 0x174   :  { %1355 = vmatprep.mubr.f32.mxu1 %v389_v46 }
 0x177   :  { %1356 = vmatmul.mubr.f32.gmra.mrb[40].mxu1 %v390_v61 }
 0x178   :  { %1358 = vmatprep.mubr.f32.mxu1 %v391_v54 }
 0x17b   :  { %1359 = vmatmul.mubr.f32.gmra.mrb[42].mxu1 %v392_v1 }
 0x17c   :  { %1361 = vmatprep.mubr.f32.mxu1 %v393_v62 }
 0x17f   :  { %1362 = vmatmul.mubr.f32.gmra.mrb[44].mxu1 %v394_v4 }
 0x180   :  { %1364 = vmatprep.mubr.f32.mxu1 %v395_v3 }
 0x183   :  { %1365 = vmatmul.mubr.f32.gmra.mrb[46].mxu1 %v396_v6 }
 0x21a   :  { %v1321_v11 = vpop.f32.mrb[16].mxu1 }
 0x21b   :  { %v492_v12 = vadd.f32 %v1321_v11, %v1903_v10  ;;  %v486_v13 = vpop.f32.mrb[17].mxu1 }
 0x21c   :  { %v487_v37 = vadd.f32 %v1903_v10, %v486_v13 }
 0x21d   :  { %v646_v16 = vmax.f32 %v492_v12, 0.0 }
 0x21e   :  { %v645_v14 = vmax.f32 %v487_v37, 0.0  ;;  %v1324_v15 = vpop.f32.mrb[18].mxu1 }
 0x21f   :  { %v502_v17 = vadd.f32 %v1324_v15, %v1903_v10  ;;  %v496_v18 = vpop.f32.mrb[19].mxu1 }
 0x220   :  { %v497_v19 = vadd.f32 %v1903_v10, %v496_v18  ;;  %1399 = vmatprep.mubr.f32.mxu0 %v645_v14 }
 0x221   :  { %1400 = vmatmul.mubr.f32.vlgmr.msra.gmra.mrb[16].mxu0 %v646_v16  ;;  %v648_v22 = vmax.f32 %v502_v17, 0.0 }
 0x222   :  { %v647_v20 = vmax.f32 %v497_v19, 0.0  ;;  %v1327_v21 = vpop.f32.mrb[20].mxu1 }
 0x223   :  { %v512_v23 = vadd.f32 %v1327_v21, %v1903_v10  ;;  %v506_v24 = vpop.f32.mrb[21].mxu1 }
 0x224   :  { %v507_v25 = vadd.f32 %v1903_v10, %v506_v24  ;;  %1402 = vmatprep.mubr.f32.mxu0 %v647_v20 }
 0x225   :  { %1403 = vmatmul.mubr.f32.gmra.mrb[18].mxu0 %v648_v22  ;;  %v650_v28 = vmax.f32 %v512_v23, 0.0 }
 0x226   :  { %v649_v26 = vmax.f32 %v507_v25, 0.0  ;;  %v1330_v27 = vpop.f32.mrb[22].mxu1 }
 0x227   :  { %v522_v29 = vadd.f32 %v1330_v27, %v1903_v10  ;;  %v516_v30 = vpop.f32.mrb[23].mxu1 }
 0x228   :  { %v517_v31 = vadd.f32 %v1903_v10, %v516_v30  ;;  %1405 = vmatprep.mubr.f32.mxu0 %v649_v26 }
 0x229   :  { %1406 = vmatmul.mubr.f32.gmra.mrb[20].mxu0 %v650_v28  ;;  %v652_v34 = vmax.f32 %v522_v29, 0.0 }
 0x22a   :  { %v651_v32 = vmax.f32 %v517_v31, 0.0  ;;  %v1333_v33 = vpop.f32.mrb[24].mxu1 }
 0x22b   :  { %v532_v35 = vadd.f32 %v1333_v33, %v1903_v10  ;;  %v526_v36 = vpop.f32.mrb[25].mxu1 }
 0x22c   :  { %v527_v38 = vadd.f32 %v1903_v10, %v526_v36  ;;  %1408 = vmatprep.mubr.f32.mxu0 %v651_v32 }
 0x22d   :  { %1409 = vmatmul.mubr.f32.gmra.mrb[22].mxu0 %v652_v34  ;;  %v654_v43 = vmax.f32 %v532_v35, 0.0 }
 0x22e   :  { %v653_v40 = vmax.f32 %v527_v38, 0.0  ;;  %v1336_v41 = vpop.f32.mrb[26].mxu1 }
 0x22f   :  { %v542_v44 = vadd.f32 %v1336_v41, %v1903_v10  ;;  %v536_v42 = vpop.f32.mrb[27].mxu1 }
 0x230   :  { %v537_v45 = vadd.f32 %v1903_v10, %v536_v42  ;;  %1411 = vmatprep.mubr.f32.mxu0 %v653_v40 }
 0x231   :  { %1412 = vmatmul.mubr.f32.gmra.mrb[24].mxu0 %v654_v43  ;;  %v656_v49 = vmax.f32 %v542_v44, 0.0 }
 0x232   :  { %v655_v47 = vmax.f32 %v537_v45, 0.0  ;;  %v1339_v48 = vpop.f32.mrb[28].mxu1  ;;  %v1940_v45 = vld [vmem:[%s2007_s6] ss:$0 sm:$0xff]  ;;  %s1715_s6 = smov [#allocation10]  }
 0x233   :  { %v552_v50 = vadd.f32 %v1339_v48, %v1903_v10  ;;  %v546_v51 = vpop.f32.mrb[29].mxu1  ;;  %s1032_s13 = sshll.u32 %s1715_s6, 4  ;;  %s1033_s13 = int_to_ptr.vmem [resolvable:$true] %s1032_s13 }
 0x234   :  { %v547_v39 = vadd.f32 %v1903_v10, %v546_v51  ;;  %1414 = vmatprep.mubr.f32.mxu0 %v655_v47  ;;  %s1655_s14 = scalar_lea.vmem %s1033_s13, 4096  ;;  %p1660_p5 = scmp.lt.s32.totalorder %s1033_s13, %s1033_s13 }
 0x235   :  { %1415 = vmatmul.mubr.f32.gmra.mrb[26].mxu0 %v656_v49  ;;  %v658_v55 = vmax.f32 %v552_v50, 0.0  ;;  %p1656_p4 = scmp.ne.s32.totalorder %s1033_s13, %s1655_s14  ;;  %p1661_p6 = scmp.lt.s32.totalorder %s1655_s14, %s1655_s14 }
 0x236   :  { %v657_v52 = vmax.f32 %v547_v39, 0.0  ;;  %v1342_v53 = vpop.f32.mrb[30].mxu1 }
 0x237   :  { %v562_v56 = vadd.f32 %v1342_v53, %v1903_v10  ;;  %v556_v46 = vpop.f32.mrb[31].mxu1  ;;  %p1662_p7 = por %p1661_p6, %p1660_p5 }
 0x238   :  { %v557_v57 = vadd.f32 %v1903_v10, %v556_v46  ;;  %1417 = vmatprep.mubr.f32.mxu0 %v657_v52 }
 0x239   :  { %1418 = vmatmul.mubr.f32.gmra.mrb[28].mxu0 %v658_v55  ;;  %v660_v54 = vmax.f32 %v562_v56, 0.0  ;;  %p1663_p8 = pnand %p1662_p7, %p1656_p4 }
 0x23a   :  { %v659_v58 = vmax.f32 %v557_v57, 0.0  ;;  %v1345_v59 = vpop.f32.mrb[32].mxu1 }
 0x23b   :  { %v572_v60 = vadd.f32 %v1345_v59, %v1903_v10  ;;  %v566_v61 = vpop.f32.mrb[33].mxu1 }
 0x23c   :  { %v567_v63 = vadd.f32 %v1903_v10, %v566_v61  ;;  %1420 = vmatprep.mubr.f32.mxu0 %v659_v58 }
 0x23d   :  { %1421 = vmatmul.mubr.f32.gmra.mrb[30].mxu0 %v660_v54  ;;  %v662_v1 = vmax.f32 %v572_v60, 0.0 }
 0x23e   :  { %v661_v62 = vmax.f32 %v567_v63, 0.0  ;;  %v1348_v0 = vpop.f32.mrb[34].mxu1 }
 0x23f   :  { %v582_v2 = vadd.f32 %v1348_v0, %v1903_v10  ;;  %v576_v3 = vpop.f32.mrb[35].mxu1 }
 0x240   :  { %v577_v4 = vadd.f32 %v1903_v10, %v576_v3  ;;  %1423 = vmatprep.mubr.f32.mxu0 %v661_v62 }
 0x241   :  { %1424 = vmatmul.mubr.f32.gmra.mrb[32].mxu0 %v662_v1  ;;  %v664_v7 = vmax.f32 %v582_v2, 0.0 }
 0x242   :  { %v663_v5 = vmax.f32 %v577_v4, 0.0  ;;  %v1351_v6 = vpop.f32.mrb[36].mxu1 }
 0x243   :  { %v592_v8 = vadd.f32 %v1351_v6, %v1903_v10  ;;  %v586_v9 = vpop.f32.mrb[37].mxu1 }
 0x244   :  { %v587_v11 = vadd.f32 %v1903_v10, %v586_v9  ;;  %1426 = vmatprep.mubr.f32.mxu0 %v663_v5 }
 0x245   :  { %1427 = vmatmul.mubr.f32.gmra.mrb[34].mxu0 %v664_v7  ;;  %v666_v37 = vmax.f32 %v592_v8, 0.0 }
 0x246   :  { %v665_v12 = vmax.f32 %v587_v11, 0.0  ;;  %v1354_v13 = vpop.f32.mrb[38].mxu1 }
 0x247   :  { %v602_v14 = vadd.f32 %v1354_v13, %v1903_v10  ;;  %v596_v15 = vpop.f32.mrb[39].mxu1 }
 0x248   :  { %v597_v16 = vadd.f32 %v1903_v10, %v596_v15  ;;  %1429 = vmatprep.mubr.f32.mxu0 %v665_v12 }
 0x249   :  { %1430 = vmatmul.mubr.f32.gmra.mrb[36].mxu0 %v666_v37  ;;  %v668_v19 = vmax.f32 %v602_v14, 0.0 }
 0x24a   :  { %v667_v17 = vmax.f32 %v597_v16, 0.0  ;;  %v1357_v18 = vpop.f32.mrb[40].mxu1 }
 0x24b   :  { %v612_v20 = vadd.f32 %v1357_v18, %v1903_v10  ;;  %v606_v21 = vpop.f32.mrb[41].mxu1 }
 0x24c   :  { %v607_v22 = vadd.f32 %v1903_v10, %v606_v21  ;;  %1432 = vmatprep.mubr.f32.mxu0 %v667_v17 }
 0x24d   :  { %1433 = vmatmul.mubr.f32.gmra.mrb[38].mxu0 %v668_v19  ;;  %v670_v25 = vmax.f32 %v612_v20, 0.0 }
 0x24e   :  { %v669_v23 = vmax.f32 %v607_v22, 0.0  ;;  %v1360_v24 = vpop.f32.mrb[42].mxu1 }
 0x24f   :  { %v622_v26 = vadd.f32 %v1360_v24, %v1903_v10  ;;  %v616_v27 = vpop.f32.mrb[43].mxu1 }
 0x250   :  { %v617_v28 = vadd.f32 %v1903_v10, %v616_v27  ;;  %1435 = vmatprep.mubr.f32.mxu0 %v669_v23 }
 0x251   :  { %1436 = vmatmul.mubr.f32.gmra.mrb[40].mxu0 %v670_v25  ;;  %v672_v31 = vmax.f32 %v622_v26, 0.0 }
 0x252   :  { %v671_v29 = vmax.f32 %v617_v28, 0.0  ;;  %v1363_v30 = vpop.f32.mrb[44].mxu1 }
 0x253   :  { %v632_v32 = vadd.f32 %v1363_v30, %v1903_v10  ;;  %v626_v33 = vpop.f32.mrb[45].mxu1 }
 0x254   :  { %v627_v34 = vadd.f32 %v1903_v10, %v626_v33  ;;  %1438 = vmatprep.mubr.f32.mxu0 %v671_v29 }
 0x255   :  { %1439 = vmatmul.mubr.f32.gmra.mrb[42].mxu0 %v672_v31  ;;  %v674_v38 = vmax.f32 %v632_v32, 0.0 }
 0x256   :  { %v673_v35 = vmax.f32 %v627_v34, 0.0  ;;  %v1366_v36 = vpop.f32.mrb[46].mxu1 }
 0x257   :  { %v642_v40 = vadd.f32 %v1366_v36, %v1903_v10  ;;  %v636_v41 = vpop.f32.mrb[47].mxu1 }
 0x258   :  { %v637_v43 = vadd.f32 %v1903_v10, %v636_v41  ;;  %1441 = vmatprep.mubr.f32.mxu0 %v673_v35 }
 0x259   :  { %1442 = vmatmul.mubr.f32.gmra.mrb[44].mxu0 %v674_v38  ;;  %v676_v42 = vmax.f32 %v642_v40, 0.0 }
 0x25a   :  { %v675_v44 = vmax.f32 %v637_v43, 0.0 }
 0x25c   :  { %1444 = vmatprep.mubr.f32.mxu0 %v675_v44 }
 0x25d   :  { %1445 = vmatmul.mubr.f32.gmra.mrb[46].mxu0 %v676_v42 }
 0x2f4   :  { %v1401_v47 = vpop.f32.mrb[16].mxu0 }
 0x2f5   :  { %v772_v48 = vadd.f32 %v1401_v47, %v1940_v45  ;;  %v766_v49 = vpop.f32.mrb[17].mxu0 }
 0x2f6   :  { %v767_v50 = vadd.f32 %v1940_v45, %v766_v49 }
 0x2f7   :  { %v926_v51 = vmax.f32 %v772_v48, 0.0 }
 0x2f8   :  { %v925_v39 = vmax.f32 %v767_v50, 0.0  ;;  %v1404_v10 = vpop.f32.mrb[18].mxu0 }
 0x2f9   :  { %958 = vst [vmem:[#allocation10 + $0x8] sm:$0xff] %v926_v51  ;;  %v782_v52 = vadd.f32 %v1404_v10, %v1940_v45  ;;  %v776_v53 = vpop.f32.mrb[19].mxu0 }
 0x2fa   :  { %957 = vst [vmem:[#allocation10] sm:$0xff] %v925_v39  ;;  %v989_v55 = vadd.f32 %v926_v51, %v925_v39  ;;  %v777_v56 = vadd.f32 %v1940_v45, %v776_v53 }
 0x2fb   :  { %v928_v46 = vmax.f32 %v782_v52, 0.0 }
 0x2fc   :  { %v927_v57 = vmax.f32 %v777_v56, 0.0  ;;  %v1407_v58 = vpop.f32.mrb[20].mxu0 }
 0x2fd   :  { %960 = vst [vmem:[#allocation10 + $0x18] sm:$0xff] %v928_v46  ;;  %v792_v59 = vadd.f32 %v1407_v58, %v1940_v45  ;;  %v786_v54 = vpop.f32.mrb[21].mxu0 }
 0x2fe   :  { %959 = vst [vmem:[#allocation10 + $0x10] sm:$0xff] %v927_v57  ;;  %v990_v60 = vadd.f32 %v989_v55, %v927_v57  ;;  %v787_v61 = vadd.f32 %v1940_v45, %v786_v54 }
 0x2ff   :  { %v930_v63 = vmax.f32 %v792_v59, 0.0 }
 0x300   :  { %v929_v62 = vmax.f32 %v787_v61, 0.0  ;;  %v991_v0 = vadd.f32 %v990_v60, %v928_v46  ;;  %v1410_v1 = vpop.f32.mrb[22].mxu0 }
 0x301   :  { %962 = vst [vmem:[#allocation10 + $0x28] sm:$0xff] %v930_v63  ;;  %v802_v2 = vadd.f32 %v1410_v1, %v1940_v45  ;;  %v796_v3 = vpop.f32.mrb[23].mxu0 }
 0x302   :  { %961 = vst [vmem:[#allocation10 + $0x20] sm:$0xff] %v929_v62  ;;  %v992_v4 = vadd.f32 %v991_v0, %v929_v62  ;;  %v797_v5 = vadd.f32 %v1940_v45, %v796_v3 }
 0x303   :  { %v932_v6 = vmax.f32 %v802_v2, 0.0 }
 0x304   :  { %v931_v7 = vmax.f32 %v797_v5, 0.0  ;;  %v993_v8 = vadd.f32 %v992_v4, %v930_v63  ;;  %v1413_v9 = vpop.f32.mrb[24].mxu0 }
 0x305   :  { %964 = vst [vmem:[#allocation10 + $0x38] sm:$0xff] %v932_v6  ;;  %v812_v11 = vadd.f32 %v1413_v9, %v1940_v45  ;;  %v806_v12 = vpop.f32.mrb[25].mxu0 }
 0x306   :  { %963 = vst [vmem:[#allocation10 + $0x30] sm:$0xff] %v931_v7  ;;  %v994_v13 = vadd.f32 %v993_v8, %v931_v7  ;;  %v807_v37 = vadd.f32 %v1940_v45, %v806_v12 }
 0x307   :  { %v934_v14 = vmax.f32 %v812_v11, 0.0 }
 0x308   :  { %v933_v15 = vmax.f32 %v807_v37, 0.0  ;;  %v995_v16 = vadd.f32 %v994_v13, %v932_v6  ;;  %v1416_v17 = vpop.f32.mrb[26].mxu0 }
 0x309   :  { %966 = vst [vmem:[#allocation10 + $0x48] sm:$0xff] %v934_v14  ;;  %v822_v18 = vadd.f32 %v1416_v17, %v1940_v45  ;;  %v816_v19 = vpop.f32.mrb[27].mxu0 }
 0x30a   :  { %965 = vst [vmem:[#allocation10 + $0x40] sm:$0xff] %v933_v15  ;;  %v996_v20 = vadd.f32 %v995_v16, %v933_v15  ;;  %v817_v21 = vadd.f32 %v1940_v45, %v816_v19 }
 0x30b   :  { %v936_v22 = vmax.f32 %v822_v18, 0.0 }
 0x30c   :  { %v935_v23 = vmax.f32 %v817_v21, 0.0  ;;  %v997_v24 = vadd.f32 %v996_v20, %v934_v14  ;;  %v1419_v25 = vpop.f32.mrb[28].mxu0 }
 0x30d   :  { %968 = vst [vmem:[#allocation10 + $0x58] sm:$0xff] %v936_v22  ;;  %v832_v26 = vadd.f32 %v1419_v25, %v1940_v45  ;;  %v826_v27 = vpop.f32.mrb[29].mxu0 }
 0x30e   :  { %967 = vst [vmem:[#allocation10 + $0x50] sm:$0xff] %v935_v23  ;;  %v998_v28 = vadd.f32 %v997_v24, %v935_v23  ;;  %v827_v29 = vadd.f32 %v1940_v45, %v826_v27 }
 0x30f   :  { %v938_v30 = vmax.f32 %v832_v26, 0.0 }
 0x310   :  { %v937_v31 = vmax.f32 %v827_v29, 0.0  ;;  %v999_v32 = vadd.f32 %v998_v28, %v936_v22  ;;  %v1422_v33 = vpop.f32.mrb[30].mxu0 }
 0x311   :  { %970 = vst [vmem:[#allocation10 + $0x68] sm:$0xff] %v938_v30  ;;  %v842_v34 = vadd.f32 %v1422_v33, %v1940_v45  ;;  %v836_v35 = vpop.f32.mrb[31].mxu0 }
 0x312   :  { %969 = vst [vmem:[#allocation10 + $0x60] sm:$0xff] %v937_v31  ;;  %v1000_v36 = vadd.f32 %v999_v32, %v937_v31  ;;  %v837_v38 = vadd.f32 %v1940_v45, %v836_v35 }
 0x313   :  { %v940_v40 = vmax.f32 %v842_v34, 0.0 }
 0x314   :  { %v939_v41 = vmax.f32 %v837_v38, 0.0  ;;  %v1001_v43 = vadd.f32 %v1000_v36, %v938_v30  ;;  %v1425_v44 = vpop.f32.mrb[32].mxu0 }
 0x315   :  { %972 = vst [vmem:[#allocation10 + $0x78] sm:$0xff] %v940_v40  ;;  %v852_v42 = vadd.f32 %v1425_v44, %v1940_v45  ;;  %v846_v47 = vpop.f32.mrb[33].mxu0 }
 0x316   :  { %971 = vst [vmem:[#allocation10 + $0x70] sm:$0xff] %v939_v41  ;;  %v1002_v48 = vadd.f32 %v1001_v43, %v939_v41  ;;  %v847_v49 = vadd.f32 %v1940_v45, %v846_v47 }
 0x317   :  { %v942_v50 = vmax.f32 %v852_v42, 0.0 }
 0x318   :  { %v941_v51 = vmax.f32 %v847_v49, 0.0  ;;  %v1003_v39 = vadd.f32 %v1002_v48, %v940_v40  ;;  %v1428_v10 = vpop.f32.mrb[34].mxu0 }
 0x319   :  { %974 = vst [vmem:[#allocation10 + $0x88] sm:$0xff] %v942_v50  ;;  %v862_v52 = vadd.f32 %v1428_v10, %v1940_v45  ;;  %v856_v53 = vpop.f32.mrb[35].mxu0 }
 0x31a   :  { %973 = vst [vmem:[#allocation10 + $0x80] sm:$0xff] %v941_v51  ;;  %v1004_v55 = vadd.f32 %v1003_v39, %v941_v51  ;;  %v857_v56 = vadd.f32 %v1940_v45, %v856_v53 }
 0x31b   :  { %v944_v46 = vmax.f32 %v862_v52, 0.0 }
 0x31c   :  { %v943_v57 = vmax.f32 %v857_v56, 0.0  ;;  %v1005_v58 = vadd.f32 %v1004_v55, %v942_v50  ;;  %v1431_v59 = vpop.f32.mrb[36].mxu0 }
 0x31d   :  { %976 = vst [vmem:[#allocation10 + $0x98] sm:$0xff] %v944_v46  ;;  %v872_v54 = vadd.f32 %v1431_v59, %v1940_v45  ;;  %v866_v60 = vpop.f32.mrb[37].mxu0 }
 0x31e   :  { %975 = vst [vmem:[#allocation10 + $0x90] sm:$0xff] %v943_v57  ;;  %v1006_v61 = vadd.f32 %v1005_v58, %v943_v57  ;;  %v867_v63 = vadd.f32 %v1940_v45, %v866_v60 }
 0x31f   :  { %v946_v62 = vmax.f32 %v872_v54, 0.0 }
 0x320   :  { %v945_v0 = vmax.f32 %v867_v63, 0.0  ;;  %v1007_v1 = vadd.f32 %v1006_v61, %v944_v46  ;;  %v1434_v2 = vpop.f32.mrb[38].mxu0 }
 0x321   :  { %978 = vst [vmem:[#allocation10 + $0xa8] sm:$0xff] %v946_v62  ;;  %v882_v3 = vadd.f32 %v1434_v2, %v1940_v45  ;;  %v876_v4 = vpop.f32.mrb[39].mxu0 }
 0x322   :  { %977 = vst [vmem:[#allocation10 + $0xa0] sm:$0xff] %v945_v0  ;;  %v1008_v5 = vadd.f32 %v1007_v1, %v945_v0  ;;  %v877_v6 = vadd.f32 %v1940_v45, %v876_v4 }
 0x323   :  { %v948_v7 = vmax.f32 %v882_v3, 0.0 }
 0x324   :  { %v947_v8 = vmax.f32 %v877_v6, 0.0  ;;  %v1009_v9 = vadd.f32 %v1008_v5, %v946_v62  ;;  %v1437_v11 = vpop.f32.mrb[40].mxu0 }
 0x325   :  { %980 = vst [vmem:[#allocation10 + $0xb8] sm:$0xff] %v948_v7  ;;  %v892_v12 = vadd.f32 %v1437_v11, %v1940_v45  ;;  %v886_v13 = vpop.f32.mrb[41].mxu0 }
 0x326   :  { %979 = vst [vmem:[#allocation10 + $0xb0] sm:$0xff] %v947_v8  ;;  %v1010_v37 = vadd.f32 %v1009_v9, %v947_v8  ;;  %v887_v14 = vadd.f32 %v1940_v45, %v886_v13 }
 0x327   :  { %v950_v15 = vmax.f32 %v892_v12, 0.0 }
 0x328   :  { %v949_v16 = vmax.f32 %v887_v14, 0.0  ;;  %v1011_v17 = vadd.f32 %v1010_v37, %v948_v7  ;;  %v1440_v18 = vpop.f32.mrb[42].mxu0 }
 0x329   :  { %982 = vst [vmem:[#allocation10 + $0xc8] sm:$0xff] %v950_v15  ;;  %v902_v19 = vadd.f32 %v1440_v18, %v1940_v45  ;;  %v896_v20 = vpop.f32.mrb[43].mxu0 }
 0x32a   :  { %981 = vst [vmem:[#allocation10 + $0xc0] sm:$0xff] %v949_v16  ;;  %v1012_v21 = vadd.f32 %v1011_v17, %v949_v16  ;;  %v897_v22 = vadd.f32 %v1940_v45, %v896_v20 }
 0x32b   :  { %v952_v23 = vmax.f32 %v902_v19, 0.0 }
 0x32c   :  { %v951_v24 = vmax.f32 %v897_v22, 0.0  ;;  %v1013_v25 = vadd.f32 %v1012_v21, %v950_v15  ;;  %v1443_v26 = vpop.f32.mrb[44].mxu0 }
 0x32d   :  { %984 = vst [vmem:[#allocation10 + $0xd8] sm:$0xff] %v952_v23  ;;  %v912_v27 = vadd.f32 %v1443_v26, %v1940_v45  ;;  %v906_v28 = vpop.f32.mrb[45].mxu0 }
 0x32e   :  { %983 = vst [vmem:[#allocation10 + $0xd0] sm:$0xff] %v951_v24  ;;  %v1014_v29 = vadd.f32 %v1013_v25, %v951_v24  ;;  %v907_v30 = vadd.f32 %v1940_v45, %v906_v28 }
 0x32f   :  { %v954_v31 = vmax.f32 %v912_v27, 0.0 }
 0x330   :  { %v953_v32 = vmax.f32 %v907_v30, 0.0  ;;  %v1015_v33 = vadd.f32 %v1014_v29, %v952_v23  ;;  %v1446_v34 = vpop.f32.mrb[46].mxu0 }
 0x331   :  { %986 = vst [vmem:[#allocation10 + $0xe8] sm:$0xff] %v954_v31  ;;  %v922_v35 = vadd.f32 %v1446_v34, %v1940_v45  ;;  %v916_v36 = vpop.f32.mrb[47].mxu0 }
 0x332   :  { %985 = vst [vmem:[#allocation10 + $0xe0] sm:$0xff] %v953_v32  ;;  %v1016_v38 = vadd.f32 %v1015_v33, %v953_v32  ;;  %v917_v40 = vadd.f32 %v1940_v45, %v916_v36 }
 0x333   :  { %v956_v41 = vmax.f32 %v922_v35, 0.0 }
 0x334   :  { %v955_v43 = vmax.f32 %v917_v40, 0.0  ;;  %v1017_v44 = vadd.f32 %v1016_v38, %v954_v31 }
 0x335   :  { %988 = vst [vmem:[#allocation10 + $0xf8] sm:$0xff] %v956_v41 }
 0x336   :  { %987 = vst [vmem:[#allocation10 + $0xf0] sm:$0xff] %v955_v43  ;;  %v1018_v42 = vadd.f32 %v1017_v44, %v955_v43 }
 0x337   :  { %1666 = shalt.err (!%p1663_p8)
}
 0x338   :  { %s1667_s19 = scalar_lea.hbm %s2008_s7, 4096 }
 0x339   :  { %p1668_p9 = scmp.ne.s32.totalorder %s2008_s7, %s1667_s19  ;;  %p1671_p10 = scmp.lt.u32.totalorder %s1667_s19, %s2008_s7 }
 0x33b   :  { %p1673_p11 = pnand %p1671_p10, %p1668_p9 }
 0x33d   :  { %1676 = shalt.err (!%p1673_p11)
}
 0x33e   :  { %1038 = dma.vmem_to_hbm [thread:$0]  %s1033_s13, 4096, %s2008_s7, [#allocation4], %s1711_s17, %s1711_s17, %s1712_s18   ;;  %v1019_v45 = vadd.f32 %v1018_v42, %v956_v41 }
 0x33f   :  { %s1716_s24 = smov [#allocation11]  }
 0x340   :  { %v1020_v47 = vrot.slane %v1019_v45, 4  ;;  %s1045_s25 = sshll.u32 %s1716_s24, 4  ;;  %s1046_s25 = int_to_ptr.vmem [resolvable:$true] %s1045_s25 }
 0x341   :  { %s1677_s26 = scalar_lea.vmem %s1046_s25, 16  ;;  %s1681_s27 = scalar_lea.vmem %s1046_s25, 32 }
 0x342   :  { %v1021_v48 = vadd.f32 %v1020_v47, %v1019_v45  ;;  %p1678_p12 = scmp.ne.s32.totalorder %s1046_s25, %s1677_s26  ;;  %p1682_p13 = scmp.lt.s32.totalorder %s1046_s25, %s1046_s25 }
 0x343   :  { %p1683_p0 = scmp.lt.s32.totalorder %s1681_s27, %s1677_s26 }
 0x344   :  { %v1022_v49 = vrot.slane %v1021_v48, 2 }
 0x345   :  { %p1684_p1 = por %p1683_p0, %p1682_p13 }
 0x346   :  { %v1023_v50 = vadd.f32 %v1022_v49, %v1021_v48 }
 0x347   :  { %p1685_p2 = pnand %p1684_p1, %p1678_p12 }
 0x348   :  { %v1024_v51 = vrot.slane %v1023_v50, 1 }
 0x34a   :  { %v1025_v39 = vadd.f32 %v1024_v51, %v1023_v50 }
 0x34c   :  { %1026 = vst [vmem:[#allocation11] sm:$0x1] %v1025_v39 }
 0x34d   :  { %1688 = shalt.err (!%p1685_p2)
}
 0x34e   :  { %s1689_s18 = scalar_lea.hbm %s2009_s8, 16 }
 0x34f   :  { %p1690_p3 = scmp.ne.s32.totalorder %s2009_s8, %s1689_s18  ;;  %p1693_p4 = scmp.lt.u32.totalorder %s1689_s18, %s2009_s8 }
 0x351   :  { %p1695_p5 = pnand %p1693_p4, %p1690_p3 }
 0x353   :  { %1698 = shalt.err (!%p1695_p5)
}
 0x354   :  { %1048 = dma.vmem_to_hbm [thread:$0]  %s1046_s25, 16, %s2009_s8, [#allocation12]  }
 0x355   :  { %1705 = dma.done.wait [#allocation4], 4096  }
 0x356   :  { %1706 = vsyncadd [#allocation4], 4294963200 }
 0x357   :  { %1707 = dma.done.wait [#allocation12], 16  }
 0x358   :  { %1708 = vsyncadd [#allocation12], 4294967280 }
 0x359   :  { %1055 = vsyncpa [#allocation3], 1 }
 0x35a   :  { %1056 = vsyncpa [#allocation6], 1 }
 0x35b   :  { %1057 = vsyncpa [#allocation9], 1 }
 0x35c   :  { %1058 = vsyncpa [#allocation4], 1 }
 0x35d   :  { %1059 = vsyncpa [#allocation12], 1 }

</bundles_post_ra>
